<compile_context>
chip_gen: v6e
topology: v6e:2x2x1
jax: 0.10.0
libtpu: 0.0.40
codegen_flags: <defaults>
</compile_context>

<pallas_src>
import functools

import jax
import jax.numpy as jnp
import numpy as np
from jax.experimental import pallas as pl
from jax.experimental.pallas import tpu as pltpu


# -----------------------------------------------------------------------------
# helpers
# -----------------------------------------------------------------------------
def _round_up(x, m):
    return ((x + m - 1) // m) * m


def _pad2d(a, rows, cols):
    r, c = a.shape
    return jnp.pad(a, ((0, rows - r), (0, cols - c)))


def _choose_row_tile(rows):
    """Per-image row tile for kernel 1.

    The channel-major output tile has the row axis in lanes, so the tile must be
    a multiple of 128 or the full per-image extent.  Small feature maps use one
    tile per image; grid parallelism then comes from the batch axis (keeps >=2
    parallel steps for v7x's two TensorCores).
    """
    if rows <= 1024:
        return rows, rows
    tmi = 512  # TODO(synk): sweep 512..2048 on v5e/v6e (128 MiB VMEM); cap on v7x
    return tmi, _round_up(rows, tmi)


def _choose_th(h):
    """Output-row tile for the resize: prefer >=2 tiles (v7x megacore), TH % 8 == 0."""
    for th in (256, 128, 64, 32, 16, 8):
        if h % th == 0 and h // th >= 2:
            return th
    return h


def _resident_spec(block_shape, index_map):
    """BlockSpec for blocks with a constant index_map: single-buffer them so the
    default double-buffering does not double their VMEM footprint (matters once
    c_mid grows to real DeepLab widths, esp. on v7x's 64 MiB VMEM)."""
    try:
        return pl.BlockSpec(block_shape, index_map, pipeline_mode=pl.Buffered(1))
    except (AttributeError, TypeError):   # very old jax: fall back to defaults
        return pl.BlockSpec(block_shape, index_map)


def im2col(x_nhwc, kh, kw, stride, pad):
    N, H, W, C = x_nhwc.shape
    xp = jnp.pad(x_nhwc, ((0, 0), (pad, pad), (pad, pad), (0, 0)))
    Ho = (H + 2 * pad - kh) // stride + 1
    Wo = (W + 2 * pad - kw) // stride + 1
    cols = []
    for i in range(kh):
        for j in range(kw):
            cols.append(xp[:, i:i + stride * Ho:stride, j:j + stride * Wo:stride, :])
    patches = jnp.concatenate(cols, axis=-1)                 # (N, Ho, Wo, kh*kw*C)
    return patches.reshape(N * Ho * Wo, kh * kw * C), Ho, Wo


def bilinear_matrix(out_size, in_size):
    """Matches F.interpolate(mode='bilinear', align_corners=False)."""
    if out_size == in_size:
        return np.eye(out_size, dtype=np.float32)
    scale = in_size / out_size
    dst = np.arange(out_size, dtype=np.float64)
    src = np.clip((dst + 0.5) * scale - 0.5, 0.0, None)
    x0 = np.minimum(np.floor(src).astype(np.int64), in_size - 1)
    x1 = np.minimum(x0 + 1, in_size - 1)
    w1 = np.clip(src - x0, 0.0, 1.0)
    w0 = 1.0 - w1
    M = np.zeros((out_size, in_size), dtype=np.float32)
    M[np.arange(out_size), x0] += w0
    M[np.arange(out_size), x1] += w1
    return M


# -----------------------------------------------------------------------------
# Kernel 1: fused (im2col'd conv + bias + ReLU) -> all classifier heads,
#           channel-major bf16 epilogue.
#   per (image n, row tile i):
#     logits = relu(patches @ W1 + b1) @ W2 + b2          (bf16 MXU, f32 acc)
#     store  logits.T[:C_heads]  as bf16                  (C, rows) per tile
# -----------------------------------------------------------------------------
def _fused_conv_cls_kernel(p_ref, w1_ref, b1_ref, w2_ref, b2_ref, o_ref):
    p = p_ref[0]                                                   # (tmi, Kp) bf16
    acc = jnp.dot(p, w1_ref[...], preferred_element_type=jnp.float32)   # (tmi, Cmp)
    feats = jnp.maximum(acc + b1_ref[...], 0.0)                    # f32, never hits HBM
    logits = jnp.dot(feats.astype(jnp.bfloat16), w2_ref[...],
                     preferred_element_type=jnp.float32)           # (tmi, Np)
    logits = logits + b2_ref[...]
    c_out = o_ref.shape[1]
    # Channel-major epilogue: XLU transpose overlaps the MXU work; drops padded
    # head columns so only the real heads are written back (bf16).
    logits_t = jnp.transpose(logits)                               # (Np, tmi)
    o_ref[0] = logits_t[:c_out].astype(o_ref.dtype)                # (c_out, tmi)


def fused_conv_classifier(patches, w1, b1, w2, b2, *, c_out, tmi):
    N, rows_p, Kp = patches.shape
    Cmp = w1.shape[1]
    Np = w2.shape[1]
    assert rows_p % tmi == 0 and Kp % 128 == 0 and Cmp % 128 == 0 and Np % 128 == 0
    assert c_out % 8 == 0
    return pl.pallas_call(
        _fused_conv_cls_kernel,
        out_shape=jax.ShapeDtypeStruct((N, c_out, rows_p), jnp.bfloat16),
        grid_spec=pltpu.PrefetchScalarGridSpec(
            num_scalar_prefetch=0,
            grid=(N, rows_p // tmi),
            in_specs=[
                pl.BlockSpec((1, tmi, Kp), lambda n, i: (n, i, 0)),   # patch rows (pipelined)
                _resident_spec((Kp, Cmp), lambda n, i: (0, 0)),       # conv weight (resident)
                _resident_spec((1, Cmp), lambda n, i: (0, 0)),        # conv bias
                _resident_spec((Cmp, Np), lambda n, i: (0, 0)),       # fused head weight
                _resident_spec((1, Np), lambda n, i: (0, 0)),         # fused head bias
            ],
            out_specs=pl.BlockSpec((1, c_out, tmi), lambda n, i: (n, 0, i)),
        ),
        compiler_params=pltpu.CompilerParams(
            dimension_semantics=("parallel", "parallel"),
            # NOTE: sweep up to ~64-96 MiB on v5e/v6e (128 MiB parts); keep
            # <=~48 MiB on v7x (64 MiB physical). Tiles here are far below this.
            vmem_limit_bytes=32 * 1024 * 1024,
        ),
    )(patches, w1, b1, w2, b2)


# -----------------------------------------------------------------------------
# Kernel 2: bilinear resize, channel-major in, NCHW (unpadded channels) out.
#   per (image n, output-row tile t):
#     t   = einsum_c( Uh_tile @ x[c] )           # batched over <=32 channels
#     out = (t.reshape(C*TH, Wf) @ Uw^T)         # ONE 2-D MXU matmul for the W axis
#   stored as (C, TH, W) -> channel slice + NCHW transpose are fused away.
# -----------------------------------------------------------------------------
def _resize_kernel(x_ref, uwt_ref, uh_ref, o_ref, *, total_ch):
    _, c_p8, hf, wf = x_ref.shape
    th = uh_ref.shape[0]
    w = uwt_ref.shape[1]
    x = x_ref[...].reshape(c_p8, hf, wf).astype(jnp.float32)       # (C, Hf, Wf)
    # H-resize: batched matmul over the small channel dim.  The broadcast is only
    # c_p8*TH*Hf floats (KBs) -- unlike the old H-fold copy of the (W, Wf) matrix.
    uh_b = jnp.broadcast_to(uh_ref[...][None], (c_p8, th, hf))
    t = jnp.einsum("cht,ctw->chw", uh_b, x,
                   preferred_element_type=jnp.float32)             # (C, TH, Wf)
    # W-resize: single 2-D MXU contraction; reshapes only merge/split row dims.
    r = jnp.dot(t.reshape(c_p8 * th, wf), uwt_ref[...],
                preferred_element_type=jnp.float32)                # (C*TH, W)
    out = r.reshape(c_p8, th, w)
    o_ref[0] = out[:total_ch].astype(o_ref.dtype)                  # NCHW tile


def bilinear_resize_to_nchw(logits_cm, uwt, uh, *, total_ch):
    N, c_p8, Hf, Wf = logits_cm.shape
    H = uh.shape[0]
    W = uwt.shape[1]
    TH = _choose_th(H)
    return pl.pallas_call(
        functools.partial(_resize_kernel, total_ch=total_ch),
        out_shape=jax.ShapeDtypeStruct((N, total_ch, H, W), jnp.float32),
        grid_spec=pltpu.PrefetchScalarGridSpec(
            num_scalar_prefetch=0,
            grid=(N, H // TH),
            in_specs=[
                pl.BlockSpec((1, c_p8, Hf, Wf), lambda n, t: (n, 0, 0, 0)),  # bf16 logits
                _resident_spec((Wf, W), lambda n, t: (0, 0)),                # Uw^T (resident)
                pl.BlockSpec((TH, Hf), lambda n, t: (t, 0)),                 # Uh row tile
            ],
            out_specs=pl.BlockSpec((1, total_ch, TH, W), lambda n, t: (n, 0, t, 0)),
        ),
        compiler_params=pltpu.CompilerParams(
            dimension_semantics=("parallel", "parallel"),
            vmem_limit_bytes=32 * 1024 * 1024,
        ),
    )(logits_cm, uwt, uh)


# -----------------------------------------------------------------------------
# Parameters (PyTorch layouts)
# -----------------------------------------------------------------------------
def init_params(key, c_in, c_mid, num_classes, num_probes):
    ks = jax.random.split(key, 6)
    return {
        # backbone: 3x3 conv stride 2 (PyTorch layout (Cout, Cin, kh, kw))
        "bb_w": jax.random.normal(ks[0], (c_mid, c_in, 3, 3), jnp.float32) * 0.1,
        "bb_b": jax.random.normal(ks[1], (c_mid,), jnp.float32) * 0.1,
        # main classifier head: 1x1 conv
        "cls_w": jax.random.normal(ks[2], (num_classes, c_mid, 1, 1), jnp.float32) * 0.1,
        "cls_b": jax.random.normal(ks[3], (num_classes,), jnp.float32) * 0.1,
        # probe heads: 1x1 convs
        "probe_w": jax.random.normal(
            ks[4], (num_probes, num_classes, c_mid, 1, 1), jnp.float32) * 0.1,
        "probe_b": jax.random.normal(
            ks[5], (num_probes, num_classes), jnp.float32) * 0.1,
    }


# -----------------------------------------------------------------------------
# Forward pass (mirrors MultiOutputDeepLab.forward)
# -----------------------------------------------------------------------------
def multi_output_deeplab_forward(params, x_nchw, num_classes, num_probes):
    N, C_in, H, W = x_nchw.shape
    x_nhwc = jnp.transpose(x_nchw, (0, 2, 3, 1))

    # ---- im2col for the 3x3 / stride-2 / pad-1 backbone conv (XLA side) ----
    patches, Hf, Wf = im2col(x_nhwc, 3, 3, stride=2, pad=1)   # (N*Hf*Wf, 9*C_in)
    K = patches.shape[1]
    c_mid = params["bb_w"].shape[0]
    total_ch = (1 + num_probes) * num_classes

    # ---- pad contraction / lane dims to multiples of 128 ----
    Kp = _round_up(K, 128)
    Cmp = _round_up(c_mid, 128)
    Np = _round_up(total_ch, 128)
    c_p8 = _round_up(total_ch, 8)          # channel-major row count (sublane mult.)

    rows = Hf * Wf                          # feature pixels per image
    tmi, rows_p = _choose_row_tile(rows)

    patches = patches.reshape(N, rows, K)
    patches_p = jnp.pad(
        patches, ((0, 0), (0, rows_p - rows), (0, Kp - K))).astype(jnp.bfloat16)

    w1 = jnp.transpose(params["bb_w"], (2, 3, 1, 0)).reshape(K, c_mid)
    w1 = _pad2d(w1, Kp, Cmp).astype(jnp.bfloat16)
    b1 = jnp.pad(params["bb_b"], (0, Cmp - c_mid)).reshape(1, Cmp).astype(jnp.float32)

    w_main = params["cls_w"][:, :, 0, 0].T                    # (c_mid, nc)
    w_probes = jnp.transpose(params["probe_w"][:, :, :, 0, 0], (2, 0, 1)) \
        .reshape(c_mid, num_probes * num_classes)             # (c_mid, P*nc)
    w_all = jnp.concatenate([w_main, w_probes], axis=1)       # (c_mid, total_ch)
    w_all = _pad2d(w_all, Cmp, Np).astype(jnp.bfloat16)
    b_all = jnp.concatenate([params["cls_b"], params["probe_b"].reshape(-1)])
    b_all = jnp.pad(b_all, (0, Np - total_ch)).reshape(1, Np).astype(jnp.float32)

    # ---- Kernel 1: conv-as-matmul + ReLU + all heads, channel-major bf16 out ----
    logits_cm = fused_conv_classifier(
        patches_p, w1, b1, w_all, b_all, c_out=c_p8, tmi=tmi)      # (N, c_p8, rows_p)
    # drop padded rows (no-op when rows_p == rows) and view as (N, C, Hf, Wf)
    logits_cm = logits_cm[:, :, :rows].reshape(N, c_p8, Hf, Wf)

    # ---- Kernel 2: tiled bilinear upsample straight to unpadded NCHW ----
    uh = jnp.asarray(bilinear_matrix(H, Hf))                   # (H, Hf)
    uwt = jnp.asarray(bilinear_matrix(W, Wf).T)                # (Wf, W)
    up = bilinear_resize_to_nchw(logits_cm, uwt, uh, total_ch=total_ch)
    # up: (N, total_ch, H, W) f32 -- already NCHW, no XLA slice/transpose passes.

    out = up[:, :num_classes]
    contextual_out = [
        up[:, num_classes * (k + 1): num_classes * (k + 2)] for k in range(num_probes)
    ]
    return {"out": out, "contextual_out": contextual_out}


# -----------------------------------------------------------------------------
# Pure-JAX f32 reference (independent code path) for a sanity check
# -----------------------------------------------------------------------------
def reference_forward(params, x_nchw, num_classes, num_probes):
    N, C_in, H, W = x_nchw.shape
    x_nhwc = jnp.transpose(x_nchw, (0, 2, 3, 1))
    patches, Hf, Wf = im2col(x_nhwc, 3, 3, stride=2, pad=1)
    c_mid = params["bb_w"].shape[0]
    w1 = jnp.transpose(params["bb_w"], (2, 3, 1, 0)).reshape(9 * C_in, c_mid)
    feats = jnp.maximum(patches @ w1 + params["bb_b"], 0.0)
    w_main = params["cls_w"][:, :, 0, 0].T
    w_probes = jnp.transpose(params["probe_w"][:, :, :, 0, 0], (2, 0, 1)) \
        .reshape(c_mid, num_probes * num_classes)
    w_all = jnp.concatenate([w_main, w_probes], axis=1)
    b_all = jnp.concatenate([params["cls_b"], params["probe_b"].reshape(-1)])
    logits = feats @ w_all + b_all
    total_ch = (1 + num_probes) * num_classes
    logits = logits.reshape(N, Hf, Wf, total_ch)
    uh = jnp.asarray(bilinear_matrix(H, Hf))
    uw = jnp.asarray(bilinear_matrix(W, Wf))
    up = jnp.einsum("hH,nHWc,wW->nhwc", uh, logits, uw)
    up = jnp.transpose(up, (0, 3, 1, 2))
    out = up[:, :num_classes]
    contextual = [
        up[:, num_classes * (k + 1): num_classes * (k + 2)] for k in range(num_probes)
    ]
    return {"out": out, "contextual_out": contextual}


# -----------------------------------------------------------------------------
if __name__ == "__main__":
    key = jax.random.PRNGKey(0)
    k_in, k_param = jax.random.split(key)

    # small shapes consistent with the module's forward
    N, C_in, H, W = 2, 4, 16, 16
    C_mid, num_classes, num_probes = 32, 6, 3

    x = jax.random.normal(k_in, (N, C_in, H, W), jnp.float32)   # NCHW like PyTorch
    params = init_params(k_param, C_in, C_mid, num_classes, num_probes)

    fwd = jax.jit(functools.partial(
        multi_output_deeplab_forward,
        num_classes=num_classes, num_probes=num_probes))
    result = fwd(params, x)
    jax.block_until_ready(result["out"])
    for c in result["contextual_out"]:
        jax.block_until_ready(c)

    assert result["out"].shape == (N, num_classes, H, W)
    assert len(result["contextual_out"]) == num_probes
    assert all(c.shape == (N, num_classes, H, W) for c in result["contextual_out"])

    # numerics sanity check (bf16 MXU operands + bf16 logits -> loose tolerance)
    ref = reference_forward(params, x, num_classes, num_probes)
    np.testing.assert_allclose(np.asarray(result["out"]), np.asarray(ref["out"]),
                               rtol=5e-2, atol=5e-2)
    for a, b in zip(result["contextual_out"], ref["contextual_out"]):
        np.testing.assert_allclose(np.asarray(a), np.asarray(b), rtol=5e-2, atol=5e-2)

    print("KERNEL_OK")
</pallas_src>

<mosaic_0001>
module attributes {stable_mosaic.version = 11 : i64} {
  func.func @_fused_conv_cls_kernel(%arg0: i32, %arg1: i32, %arg2: memref<1x64x128xbf16, #tpu.memory_space<vmem>>, %arg3: memref<128x128xbf16, #tpu.memory_space<vmem>>, %arg4: memref<1x128xf32, #tpu.memory_space<vmem>>, %arg5: memref<128x128xbf16, #tpu.memory_space<vmem>>, %arg6: memref<1x128xf32, #tpu.memory_space<vmem>>, %arg7: memref<1x24x64xbf16, #tpu.memory_space<vmem>>) attributes {dimension_semantics = [#tpu.dimension_semantics<parallel>, #tpu.dimension_semantics<parallel>], iteration_bounds = array<i64: 2, 1>, scalar_prefetch = 0 : i64, scratch_operands = 0 : i64, tpu.core_type = #tpu.core_type<tc>, window_params = [{transform_indices = @transform_0, window_bounds = array<i64: 1, 64, 128>}, {pipeline_mode = #tpu.pipeline_mode<synchronous>, transform_indices = @transform_1, window_bounds = array<i64: 128, 128>}, {pipeline_mode = #tpu.pipeline_mode<synchronous>, transform_indices = @transform_2, window_bounds = array<i64: 1, 128>}, {pipeline_mode = #tpu.pipeline_mode<synchronous>, transform_indices = @transform_3, window_bounds = array<i64: 128, 128>}, {pipeline_mode = #tpu.pipeline_mode<synchronous>, transform_indices = @transform_4, window_bounds = array<i64: 1, 128>}, {transform_indices = @transform_5, window_bounds = array<i64: 1, 24, 64>}]} {
    %c0 = arith.constant 0 : index
    %c0_0 = arith.constant 0 : index
    %c0_1 = arith.constant 0 : index
    %0 = vector.load %arg2[%c0, %c0_0, %c0_1] : memref<1x64x128xbf16, #tpu.memory_space<vmem>>, vector<1x64x128xbf16>
    %1 = vector.shape_cast %0 : vector<1x64x128xbf16> to vector<64x128xbf16>
    %c0_2 = arith.constant 0 : index
    %c0_3 = arith.constant 0 : index
    %2 = vector.load %arg3[%c0_2, %c0_3] : memref<128x128xbf16, #tpu.memory_space<vmem>>, vector<128x128xbf16>
    %cst = arith.constant dense<0.000000e+00> : vector<64x128xf32>
    %3 = tpu.matmul %1, %2, %cst {dimension_numbers = #tpu.dot_dimension_numbers<[1], [0], [0], [1], [0, 0, 1, 1], [], []>} : vector<64x128xbf16>, vector<128x128xbf16>, vector<64x128xf32> -> vector<64x128xf32>
    %c0_4 = arith.constant 0 : index
    %c0_5 = arith.constant 0 : index
    %4 = vector.load %arg4[%c0_4, %c0_5] : memref<1x128xf32, #tpu.memory_space<vmem>>, vector<1x128xf32>
    %5 = vector.broadcast %4 : vector<1x128xf32> to vector<64x128xf32>
    %6 = arith.addf %3, %5 : vector<64x128xf32>
    %cst_6 = arith.constant 0.000000e+00 : f32
    %7 = vector.broadcast %cst_6 : f32 to vector<64x128xf32>
    %8 = arith.maximumf %6, %7 : vector<64x128xf32>
    %9 = arith.truncf %8 : vector<64x128xf32> to vector<64x128xbf16>
    %c0_7 = arith.constant 0 : index
    %c0_8 = arith.constant 0 : index
    %10 = vector.load %arg5[%c0_7, %c0_8] : memref<128x128xbf16, #tpu.memory_space<vmem>>, vector<128x128xbf16>
    %cst_9 = arith.constant dense<0.000000e+00> : vector<64x128xf32>
    %11 = tpu.matmul %9, %10, %cst_9 {dimension_numbers = #tpu.dot_dimension_numbers<[1], [0], [0], [1], [0, 0, 1, 1], [], []>} : vector<64x128xbf16>, vector<128x128xbf16>, vector<64x128xf32> -> vector<64x128xf32>
    %c0_10 = arith.constant 0 : index
    %c0_11 = arith.constant 0 : index
    %12 = vector.load %arg6[%c0_10, %c0_11] : memref<1x128xf32, #tpu.memory_space<vmem>>, vector<1x128xf32>
    %13 = vector.broadcast %12 : vector<1x128xf32> to vector<64x128xf32>
    %14 = arith.addf %11, %13 : vector<64x128xf32>
    %15 = tpu.transpose %14, [1, 0] : vector<64x128xf32> -> vector<128x64xf32>
    %16 = vector.extract_strided_slice %15 {offsets = [0, 0], sizes = [24, 64], strides = [1, 1]} : vector<128x64xf32> to vector<24x64xf32>
    %17 = arith.truncf %16 : vector<24x64xf32> to vector<24x64xbf16>
    %c0_12 = arith.constant 0 : index
    %c0_13 = arith.constant 0 : index
    %c0_14 = arith.constant 0 : index
    %18 = vector.load %arg7[%c0_12, %c0_13, %c0_14] : memref<1x24x64xbf16, #tpu.memory_space<vmem>>, vector<1x24x64xbf16>
    %19 = vector.shape_cast %18 : vector<1x24x64xbf16> to vector<24x64xbf16>
    %20 = vector.shape_cast %17 : vector<24x64xbf16> to vector<1x24x64xbf16>
    tpu.vector_store %arg7[%c0_12, %c0_13, %c0_14], %20 {strides = array<i32>} : memref<1x24x64xbf16, #tpu.memory_space<vmem>>, vector<1x24x64xbf16>,
    return
  }
  func.func @transform_0(%arg0: i32, %arg1: i32) -> (i32, i32, i32) {
    %c0_i32 = arith.constant 0 : i32
    %c0_i32_0 = arith.constant 0 : i32
    return %arg0, %arg1, %c0_i32 : i32, i32, i32
  }
  func.func @transform_1(%arg0: i32, %arg1: i32) -> (i32, i32) {
    %c0_i32 = arith.constant 0 : i32
    %c0_i32_0 = arith.constant 0 : i32
    %c0_i32_1 = arith.constant 0 : i32
    return %c0_i32, %c0_i32_0 : i32, i32
  }
  func.func @transform_2(%arg0: i32, %arg1: i32) -> (i32, i32) {
    %c0_i32 = arith.constant 0 : i32
    %c0_i32_0 = arith.constant 0 : i32
    %c0_i32_1 = arith.constant 0 : i32
    return %c0_i32, %c0_i32_0 : i32, i32
  }
  func.func @transform_3(%arg0: i32, %arg1: i32) -> (i32, i32) {
    %c0_i32 = arith.constant 0 : i32
    %c0_i32_0 = arith.constant 0 : i32
    %c0_i32_1 = arith.constant 0 : i32
    return %c0_i32, %c0_i32_0 : i32, i32
  }
  func.func @transform_4(%arg0: i32, %arg1: i32) -> (i32, i32) {
    %c0_i32 = arith.constant 0 : i32
    %c0_i32_0 = arith.constant 0 : i32
    %c0_i32_1 = arith.constant 0 : i32
    return %c0_i32, %c0_i32_0 : i32, i32
  }
  func.func @transform_5(%arg0: i32, %arg1: i32) -> (i32, i32, i32) {
    %c0_i32 = arith.constant 0 : i32
    %c0_i32_0 = arith.constant 0 : i32
    return %arg0, %c0_i32, %arg1 : i32, i32, i32
  }
}

module attributes {stable_mosaic.version = 11 : i64} {
  func.func @_resize_kernel(%arg0: i32, %arg1: i32, %arg2: memref<1x24x8x8xbf16, #tpu.memory_space<vmem>>, %arg3: memref<8x16xf32, #tpu.memory_space<vmem>>, %arg4: memref<8x8xf32, #tpu.memory_space<vmem>>, %arg5: memref<1x24x8x16xf32, #tpu.memory_space<vmem>>) attributes {dimension_semantics = [#tpu.dimension_semantics<parallel>, #tpu.dimension_semantics<parallel>], iteration_bounds = array<i64: 2, 2>, scalar_prefetch = 0 : i64, scratch_operands = 0 : i64, tpu.core_type = #tpu.core_type<tc>, window_params = [{transform_indices = @transform_0, window_bounds = array<i64: 1, 24, 8, 8>}, {pipeline_mode = #tpu.pipeline_mode<synchronous>, transform_indices = @transform_1, window_bounds = array<i64: 8, 16>}, {transform_indices = @transform_2, window_bounds = array<i64: 8, 8>}, {transform_indices = @transform_3, window_bounds = array<i64: 1, 24, 8, 16>}]} {
    %c0 = arith.constant 0 : index
    %c0_0 = arith.constant 0 : index
    %c0_1 = arith.constant 0 : index
    %c0_2 = arith.constant 0 : index
    %0 = vector.load %arg2[%c0, %c0_0, %c0_1, %c0_2] : memref<1x24x8x8xbf16, #tpu.memory_space<vmem>>, vector<1x24x8x8xbf16>
    %1 = vector.shape_cast %0 : vector<1x24x8x8xbf16> to vector<24x8x8xbf16>
    %2 = arith.extf %1 : vector<24x8x8xbf16> to vector<24x8x8xf32>
    %c0_3 = arith.constant 0 : index
    %c0_4 = arith.constant 0 : index
    %3 = vector.load %arg4[%c0_3, %c0_4] : memref<8x8xf32, #tpu.memory_space<vmem>>, vector<8x8xf32>
    %4 = vector.shape_cast %3 : vector<8x8xf32> to vector<1x8x8xf32>
    %5 = vector.shape_cast %4 : vector<1x8x8xf32> to vector<1x8x8xf32>
    %6 = vector.broadcast %5 : vector<1x8x8xf32> to vector<24x8x8xf32>
    "tpu.trace_start"() <{level = 10 : i32, message = "cht,ctw->chw"}> : () -> ()
    %cst = arith.constant dense<0.000000e+00> : vector<24x8x8xf32>
    %7 = tpu.matmul %6, %2, %cst {dimension_numbers = #tpu.dot_dimension_numbers<[2], [1], [1], [2], [0, 0, 0, 1, 1, 2], [0], [0]>} : vector<24x8x8xf32>, vector<24x8x8xf32>, vector<24x8x8xf32> -> vector<24x8x8xf32>
    "tpu.trace_stop"() : () -> ()
    %8 = vector.shape_cast %7 : vector<24x8x8xf32> to vector<192x8xf32>
    %c0_5 = arith.constant 0 : index
    %c0_6 = arith.constant 0 : index
    %9 = vector.load %arg3[%c0_5, %c0_6] : memref<8x16xf32, #tpu.memory_space<vmem>>, vector<8x16xf32>
    %cst_7 = arith.constant dense<0.000000e+00> : vector<192x16xf32>
    %10 = tpu.matmul %8, %9, %cst_7 {dimension_numbers = #tpu.dot_dimension_numbers<[1], [0], [0], [1], [0, 0, 1, 1], [], []>} : vector<192x8xf32>, vector<8x16xf32>, vector<192x16xf32> -> vector<192x16xf32>
    %11 = vector.shape_cast %10 : vector<192x16xf32> to vector<24x8x16xf32>
    %c0_8 = arith.constant 0 : index
    %c0_9 = arith.constant 0 : index
    %c0_10 = arith.constant 0 : index
    %c0_11 = arith.constant 0 : index
    %12 = vector.load %arg5[%c0_8, %c0_9, %c0_10, %c0_11] : memref<1x24x8x16xf32, #tpu.memory_space<vmem>>, vector<1x24x8x16xf32>
    %13 = vector.shape_cast %12 : vector<1x24x8x16xf32> to vector<24x8x16xf32>
    %14 = vector.shape_cast %11 : vector<24x8x16xf32> to vector<1x24x8x16xf32>
    tpu.vector_store %arg5[%c0_8, %c0_9, %c0_10, %c0_11], %14 {strides = array<i32>} : memref<1x24x8x16xf32, #tpu.memory_space<vmem>>, vector<1x24x8x16xf32>,
    return
  }
  func.func @transform_0(%arg0: i32, %arg1: i32) -> (i32, i32, i32, i32) {
    %c0_i32 = arith.constant 0 : i32
    %c0_i32_0 = arith.constant 0 : i32
    %c0_i32_1 = arith.constant 0 : i32
    %c0_i32_2 = arith.constant 0 : i32
    return %arg0, %c0_i32, %c0_i32_0, %c0_i32_1 : i32, i32, i32, i32
  }
  func.func @transform_1(%arg0: i32, %arg1: i32) -> (i32, i32) {
    %c0_i32 = arith.constant 0 : i32
    %c0_i32_0 = arith.constant 0 : i32
    %c0_i32_1 = arith.constant 0 : i32
    return %c0_i32, %c0_i32_0 : i32, i32
  }
  func.func @transform_2(%arg0: i32, %arg1: i32) -> (i32, i32) {
    %c0_i32 = arith.constant 0 : i32
    %c0_i32_0 = arith.constant 0 : i32
    return %arg1, %c0_i32 : i32, i32
  }
  func.func @transform_3(%arg0: i32, %arg1: i32) -> (i32, i32, i32, i32) {
    %c0_i32 = arith.constant 0 : i32
    %c0_i32_0 = arith.constant 0 : i32
    %c0_i32_1 = arith.constant 0 : i32
    return %arg0, %c0_i32, %arg1, %c0_i32_0 : i32, i32, i32, i32
  }
}

</mosaic_0001>

<bundles_post_ra>
// kernel: multi_output_deeplab_forward.2
= control target key start
LH: loop header
LB: loop body
LE: loop exit
PB: predicated region body
PF: predicated region fallthrough
CT: control target
= control target key end

     0   :  { %s921_s18 = smov 0   ;;  %s923_s19 = smov 0   ;;  %s1018_s0 = inlined_call_operand.vmem [shape: bf16[2,64,128], index: 0, kind: input, shape index: {}]   ;;  %s1019_s1 = inlined_call_operand.vmem [shape: bf16[128,128], index: 1, kind: input, shape index: {}]   ;;  %s1020_s2 = inlined_call_operand.vmem [shape: f32[1,128], index: 2, kind: input, shape index: {}]   ;;  %s1021_s3 = inlined_call_operand.vmem [shape: bf16[128,128], index: 3, kind: input, shape index: {}]   ;;  %s1022_s4 = inlined_call_operand.vmem [shape: f32[1,128], index: 4, kind: input, shape index: {}]   ;;  %s1023_s5 = inlined_call_operand.vmem [shape: bf16[2,24,64], index: 5, kind: output, shape index: {}]  }
   0x1   :  { %s925_s20 = smov 0  }
   0x2 LB: > { %s27_s21 = sadd.s32 1, %s885_s19  ;;  %p714_p0 = scmp.ge.s32.totalorder %s889_s20, 1  ;;  %s889_s20 = sphi %s925_s20, %s15_s20   ;;  %s885_s19 = sphi %s923_s19, %s1025_s19   ;;  %s881_s18 = sphi %s921_s18, %s1024_s18  }
   0x3   : > { %p29_p1 = scmp.ge.s32.totalorder %s27_s21, 2  ;;  %p208_p2 = scmp.lt.s32.totalorder %s889_s20, 3 }
   0x5   : > { %s1027_s21 = smov (%p29_p1, %s27_s21), 0  ;;  %p209_p3 = pnand %p714_p0, %p208_p2 }
   0x6   : > { %p244_p4 = scmp.lt.s32.totalorder (!%p209_p3), %s881_s18, 1 }
   0x7   : > { %212 = sbr.rel (%p209_p3) target bundleno = 584 (0x248), region = 40 }
   0xc   : > { %v847_v0 = vld [vmem:[%s1019_s1 + $0x38] sm:$0xff]   ;;  %v848_v1 = vld [vmem:[%s1019_s1 + $0x30] sm:$0xff]   ;;  %s1029_s18 = smov (!%p244_p4, %s881_s18), 1  ;;  %v849_v2 = vld [vmem:[%s1019_s1 + $0x28] sm:$0xff]   ;;  %vm623_vm0 = vcmask 519168  }
   0xd   : > { %773 = vmatprep.subr.bf16.mxu0 %v847_v0  ;;  %s745_s28 = sshll.u32 %s1029_s18, 5  ;;  %v850_v3 = vld [vmem:[%s1019_s1 + $0x20] sm:$0xff]   ;;  %v851_v5 = vld [vmem:[%s1019_s1 + $0x18] sm:$0xff]   ;;  %v860_v7 = vld [vmem:[%s1021_s3 + $0x30] sm:$0xff]   ;;  %s821_s16 = smul.u32 12, %s1029_s18 }
   0xe   : > { %774 = vmatpush3.bf16.msra.mxu0 %v847_v0  ;;  %s954_s6 = scalar_lea.vmem %s1018_s0, %s745_s28  ;;  %v859_v6 = vld [vmem:[%s1021_s3 + $0x38] sm:$0xff]   ;;  %v852_v8 = vld [vmem:[%s1019_s1 + $0x10] sm:$0xff]   ;;  %v861_v9 = vld [vmem:[%s1021_s3 + $0x28] sm:$0xff]  }
   0xf   : > { %775 = vmatprep.subr.bf16.mxu0 %v848_v1  ;;  %v855_v4 = vld [vmem:[%s954_s6] sm:$0xff]   ;;  %797 = vmatprep.subr.bf16.mxu1 %v859_v6  ;;  %v853_v10 = vld [vmem:[%s1019_s1 + $0x8] sm:$0xff]   ;;  %v863_v13 = vld [vmem:[%s1021_s3 + $0x18] sm:$0xff]   ;;  %s260_s23 = scalar_lea.vmem %s1023_s5, %s821_s16 }
  0x10   : > { %789 = vmatprep.mubr.bf16.mxu0 %v855_v4  ;;  %798 = vmatpush3.bf16.msra.mxu1 %v859_v6  ;;  %v862_v11 = vld [vmem:[%s1021_s3 + $0x20] sm:$0xff]   ;;  %v856_v14 = vld [vmem:[%s954_s6 + $0x8] sm:$0xff]   ;;  %v857_v15 = vld [vmem:[%s954_s6 + $0x10] sm:$0xff]  }
  0x11   : > { %799 = vmatprep.subr.bf16.mxu1 %v860_v7  ;;  %v854_v12 = vld [vmem:[%s1019_s1] sm:$0xff]   ;;  %v858_v16 = vld [vmem:[%s954_s6 + $0x18] sm:$0xff]   ;;  %v864_v17 = vld [vmem:[%s1021_s3 + $0x10] sm:$0xff]  }
  0x12   : > { %776 = vmatpush3.bf16.msra.mxu0 %v848_v1  ;;  %v865_v18 = vld [vmem:[%s1021_s3 + $0x8] sm:$0xff]   ;;  %v866_v19 = vld [vmem:[%s1021_s3] sm:$0xff]  }
  0x13   : > { %777 = vmatprep.subr.bf16.mxu0 %v849_v2  ;;  %v718_v22 = vld [vmem:[%s1020_s2] ss:$0 sm:$0xff] }
  0x14   : > { %800 = vmatpush3.bf16.msra.mxu1 %v860_v7  ;;  %v731_v50 = vld [vmem:[%s1022_s4] ss:$0 sm:$0xff] }
  0x15   : > { %801 = vmatprep.subr.bf16.mxu1 %v861_v9 }
  0x16   : > { %778 = vmatpush3.bf16.msra.mxu0 %v849_v2 }
  0x17   : > { %779 = vmatprep.subr.bf16.mxu0 %v850_v3 }
  0x18   : > { %802 = vmatpush3.bf16.msra.mxu1 %v861_v9 }
  0x19   : > { %803 = vmatprep.subr.bf16.mxu1 %v862_v11 }
  0x1a   : > { %780 = vmatpush3.bf16.msra.mxu0 %v850_v3 }
  0x1b   : > { %781 = vmatprep.subr.bf16.mxu0 %v851_v5 }
  0x1c   : > { %804 = vmatpush3.bf16.msra.mxu1 %v862_v11 }
  0x1d   : > { %805 = vmatprep.subr.bf16.mxu1 %v863_v13 }
  0x1e   : > { %782 = vmatpush3.bf16.msra.mxu0 %v851_v5 }
  0x1f   : > { %783 = vmatprep.subr.bf16.mxu0 %v852_v8 }
  0x20   : > { %806 = vmatpush3.bf16.msra.mxu1 %v863_v13 }
  0x21   : > { %807 = vmatprep.subr.bf16.mxu1 %v864_v17 }
  0x22   : > { %784 = vmatpush3.bf16.msra.mxu0 %v852_v8 }
  0x23   : > { %785 = vmatprep.subr.bf16.mxu0 %v853_v10 }
  0x24   : > { %808 = vmatpush3.bf16.msra.mxu1 %v864_v17 }
  0x25   : > { %809 = vmatprep.subr.bf16.mxu1 %v865_v18 }
  0x26   : > { %786 = vmatpush3.bf16.msra.mxu0 %v853_v10 }
  0x27   : > { %787 = vmatprep.subr.bf16.mxu0 %v854_v12 }
  0x28   : > { %810 = vmatpush3.bf16.msra.mxu1 %v865_v18 }
  0x29   : > { %811 = vmatprep.subr.bf16.mxu1 %v866_v19 }
  0x2a   : > { %788 = vmatpush3.bf16.msra.mxu0 %v854_v12 }
  0x2c   : > { %812 = vmatpush3.bf16.msra.mxu1 %v866_v19 }
  0x2d   : > { %790 = vmatmul.mubr.bf16.vlgmr.msra.gmra.mxu0 %v856_v14 }
  0x2e   : > { %793 = vmatprep.mubr.bf16.mxu0 %v857_v15 }
  0x35   : > { %794 = vmatmul.mubr.bf16.gmra.mxu0 %v858_v16 }
  0xed   : > { %v791_v20 = vpop.f32.mrf.mxu0 }
  0xee   : > { %v408_v26 = vadd.f32 %v791_v20, %v718_v22 }
  0xef   : > { %v399_v21 = vpop.f32.mrf.mxu0 }
  0xf0   : > { %v400_v24 = vadd.f32 %v718_v22, %v399_v21  ;;  %v432_v33 = vmax.f32 %v408_v26, 0.0 }
  0xf1   : > { %v792_v23 = vpop.f32.mrf.mxu0 }
  0xf2   : > { %v411_v25 = vadd.f32 %v792_v23, %v718_v22  ;;  %v430_v31 = vmax.f32 %v400_v24, 0.0 }
  0xf3   : > { %v402_v27 = vpop.f32.mrf.mxu0 }
  0xf4   : > { %v403_v28 = vadd.f32 %v718_v22, %v402_v27  ;;  %v433_v29 = vmax.f32 %v411_v25, 0.0 }
  0xf5   : > { %v795_v30 = vpop.f32.mrf.mxu0 }
  0xf6   : > { %v431_v32 = vmax.f32 %v403_v28, 0.0  ;;  %v424_v34 = vadd.f32 %v795_v30, %v718_v22  ;;  %v439_v38 = vpack.c.bf16 %v433_v29, %v432_v33 }
  0xf7   : > { %v415_v35 = vpop.f32.mrf.mxu0 }
  0xf8   : > { %v416_v36 = vadd.f32 %v718_v22, %v415_v35  ;;  %v438_v37 = vpack.c.bf16 %v431_v32, %v430_v31  ;;  %v436_v41 = vmax.f32 %v424_v34, 0.0 }
  0xf9   : > { %v796_v39 = vpop.f32.mrf.mxu0 }
  0xfa   : > { %v427_v40 = vadd.f32 %v796_v39, %v718_v22  ;;  %813 = vmatprep.mubr.bf16.mxu1 %v438_v37  ;;  %v434_v43 = vmax.f32 %v416_v36, 0.0 }
  0xfb   : > { %v418_v42 = vpop.f32.mrf.mxu0  ;;  %814 = vmatmul.mubr.bf16.vlgmr.msra.gmra.mxu1 %v439_v38 }
  0xfc   : > { %v437_v44 = vmax.f32 %v427_v40, 0.0  ;;  %v419_v45 = vadd.f32 %v718_v22, %v418_v42 }
  0xfe   : > { %v435_v46 = vmax.f32 %v419_v45, 0.0  ;;  %v441_v47 = vpack.c.bf16 %v437_v44, %v436_v41 }
 0x100   : > { %v440_v48 = vpack.c.bf16 %v435_v46, %v434_v43 }
 0x102   : > { %817 = vmatprep.mubr.bf16.mxu1 %v440_v48 }
 0x103   : > { %818 = vmatmul.mubr.bf16.gmra.mxu1 %v441_v47 }
 0x1bb   : > { %v815_v49 = vpop.f32.mrf.mxu1 }
 0x1bc   : > { %v556_v57 = vadd.f32 %v815_v49, %v731_v50 }
 0x1bd   : > { %v547_v51 = vpop.f32.mrf.mxu1 }
 0x1be   : > { %v548_v52 = vadd.f32 %v731_v50, %v547_v51 }
 0x1bf   : > { %v816_v53 = vpop.f32.mrf.mxu1 }
 0x1c0   : > { %578 = vxpose.xlu0.b32.start [1/8] (short) (narrow) %v548_v52, 24  ;;  %v559_v59 = vadd.f32 %v816_v53, %v731_v50 }
 0x1c1   : > { %v550_v54 = vpop.f32.mrf.mxu1 }
 0x1c2   : > { %v551_v55 = vadd.f32 %v731_v50, %v550_v54 }
 0x1c3   : > { %v819_v56 = vpop.f32.mrf.mxu1 }
 0x1c4   : > { %579 = vxpose.xlu0.b32.cont [2/8] (short) (narrow) %v551_v55, 24  ;;  %v572_v0 = vadd.f32 %v819_v56, %v731_v50 }
 0x1c5   : > { %v563_v58 = vpop.f32.mrf.mxu1 }
 0x1c6   : > { %v564_v61 = vadd.f32 %v731_v50, %v563_v58 }
 0x1c7   : > { %v820_v60 = vpop.f32.mrf.mxu1 }
 0x1c8   : > { %580 = vxpose.xlu0.b32.cont [3/8] (short) (narrow) %v556_v57, 24  ;;  %v575_v1 = vadd.f32 %v820_v60, %v731_v50 }
 0x1c9   : > { %v566_v62 = vpop.f32.mrf.mxu1 }
 0x1ca   : > { %v567_v63 = vadd.f32 %v731_v50, %v566_v62 }
 0x1cc   : > { %581 = vxpose.xlu0.b32.cont [4/8] (short) (narrow) %v559_v59, 24 }
 0x1d0   : > { %582 = vxpose.xlu0.b32.cont [5/8] (short) (narrow) %v564_v61, 24 }
 0x1d4   : > { %583 = vxpose.xlu0.b32.cont [6/8] (short) (narrow) %v567_v63, 24 }
 0x1d8   : > { %584 = vxpose.xlu0.b32.cont [7/8] (short) (narrow) %v572_v0, 24 }
 0x1dc   : > { %585 = vxpose.xlu0.b32.end [8/8] (short) (narrow) %v575_v1, 24 }
 0x23c   : > { %v594_v2 = vpop.trf.xlu0 }
 0x23d   : > { %v746_v3 = vpack.c.bf16 %v594_v2, %v594_v2 }
 0x23f   : > { %624 = vst.msk [vmem:[%s260_s23] sm:$0xf] %vm623_vm0, %v746_v3 }
 0x240   : > { %v595_v4 = vpop.trf.xlu0 }
 0x241   : > { %v747_v5 = vpack.c.bf16 %v595_v4, %v595_v4 }
 0x243   : > { %625 = vst.msk [vmem:[%s260_s23 + $0x4] sm:$0xf] %vm623_vm0, %v747_v5 }
 0x244   : > { %v596_v6 = vpop.trf.xlu0 }
 0x245   : > { %v748_v7 = vpack.c.bf16 %v596_v6, %v596_v6 }
 0x247   : > { %626 = vst.msk [vmem:[%s260_s23 + $0x8] sm:$0xf] %vm623_vm0, %v748_v7 }
 0x248 PF: > { %s15_s20 = sadd.s32 1, %s889_s20   ;;  %s1024_s18 = smov %s885_s19 }
 0x249   : > { %p12_p5 = scmp.ge.s32.totalorder %s15_s20, 4   ;;  %s1025_s19 = smov %s1027_s21 }
 0x24b   :  { %14 = sbr.rel (!%p12_p5) target bundleno = 2 (0x2), region = 70 }

// kernel: multi_output_deeplab_forward.3
= control target key start
LH: loop header
LB: loop body
LE: loop exit
PB: predicated region body
PF: predicated region fallthrough
CT: control target
= control target key end

     0   :  { %s2913_s12 = smov 0   ;;  %s2915_s13 = smov 0   ;;  %s3274_s0 = inlined_call_operand.vmem [shape: bf16[2,24,8,8], index: 0, kind: input, shape index: {}]   ;;  %s3275_s1 = inlined_call_operand.vmem [shape: f32[8,16], index: 1, kind: input, shape index: {}]   ;;  %s3276_s2 = inlined_call_operand.vmem [shape: f32[16,8], index: 2, kind: input, shape index: {}]   ;;  %s3277_s3 = inlined_call_operand.vmem [shape: f32[2,24,16,16], index: 3, kind: output, shape index: {}]  }
   0x1   :  { %s2917_s14 = smov 0   ;;  %s2919_s15 = smov 0  }
   0x2   :  { %s2921_s16 = smov 0   ;;  %s2923_s17 = smov 0  }
   0x3   :  { %s2925_s18 = smov 0  }
   0x4 LB: > { %s22_s19 = sadd.s32 1, %s2881_s16  ;;  %s25_s20 = sadd.s32 1, %s2885_s17  ;;  %s2889_s18 = sphi %s2925_s18, %s13_s18   ;;  %s2885_s17 = sphi %s2923_s17, %s3284_s17   ;;  %s2881_s16 = sphi %s2921_s16, %s3283_s16   ;;  %s2877_s15 = sphi %s2919_s15, %s3282_s15   ;;  %s2873_s14 = sphi %s2917_s14, %s3281_s14   ;;  %s2869_s13 = sphi %s2915_s13, %s3280_s13   ;;  %s2865_s12 = sphi %s2913_s12, %s3279_s12  }
   0x5   : > { %p23_p0 = scmp.ge.s32.totalorder %s22_s19, 2  ;;  %s2424_s21 = sadd.s32 4294967295, %s2889_s18  }
   0x6   : > { %p117_p1 = scmp.ne.s32.totalorder %s2869_s13, %s2865_s12  ;;  %p118_p2 = scmp.eq.s32.totalorder %s2424_s21, 3 }
   0x7   : > { %s3286_s19 = smov (%p23_p0, %s22_s19), 0  ;;  %s3288_s20 = smov (!%p23_p0, %s25_s20), %s2885_s17 }
   0x8   : > { %s103_s22 = ssub.s32 %s2881_s16, %s3286_s19  ;;  %p27_p3 = scmp.ge.s32.totalorder %s3288_s20, 2 }
   0x9   : > { %p2428_p4 = scmp.ge.s32.totalorder %s2889_s18, 1  ;;  %p2959_p5 = por %p118_p2, %p117_p1 }
   0xa   : > { %p160_p6 = scmp.lt.s32.totalorder %s2889_s18, 5  ;;  %s3290_s20 = smov (%p27_p3, %s3288_s20), 0 }
   0xb   : > { %s102_s24 = ssub.s32 %s2885_s17, %s3290_s20  ;;  %s107_s26 = sadd.s32 1, %s2869_s13 }
   0xc   : > { %p161_p7 = pnand %p2428_p4, %p160_p6  ;;  %s104_s25 = sor.u32 %s103_s22, %s102_s24 }
   0xd   : > { %p105_p8 = scmp.eq.s32.totalorder %s104_s25, 0  ;;  %p187_p9 = scmp.lt.s32.totalorder (!%p161_p7), %s2877_s15, 1 }
   0xe   : > { %164 = sbr.rel (%p161_p7) target bundleno = 470 (0x1d6), region = 32  ;;  %p192_p10 = scmp.lt.s32.totalorder (!%p161_p7), %s2873_s14, 1 }
   0xf   : > { %s2970_s27 = scalar_select %p105_p8, %s2869_s13, %s107_s26  }
  0x10   : > { %s184_s22 = sand.u32 (!%p161_p7), 1, %s2865_s12  }
  0x11   : > { %s2774_s24 = smul.u32 (!%p161_p7), 192, %s184_s22 }
  0x13   : > { %v2891_v0 = vmov 0.0   ;;  %s188_s28 = scalar_select %p187_p9, %s2877_s15, 1  ;;  %vm2892_vm0 = vmmov 0   ;;  %vm245_vm1 = vcmask 64512   ;;  %v1929_v38 = vld [vmem:[%s3275_s1] sm:$0xff]  ;;  %vm2187_vm2 = vcmask 130048  }
  0x14   : > { %2614 = vmatprep.subr.mxu0 %v2891_v0  ;;  %2619 = vmatprep.subr.mxu1 %v2891_v0  ;;  %s193_s29 = scalar_select %p192_p10, %s2873_s14, 1 }
  0x15   : > { %2616 = vmatprep.mubr.msk.f32.mxu0 %vm2892_vm0, %v2891_v0  ;;  %2621 = vmatprep.mubr.msk.f32.mxu1 %vm2892_vm0, %v2891_v0  ;;  %s2775_s30 = smul.u32 96, %s188_s28  ;;  %s3146_s25 = scalar_lea.vmem [#allocation2], %s2774_s24 }
  0x16   : > { %s2430_s4 = sshll.u32 %s193_s29, 3  ;;  %s2776_s12 = smul.u32 (%p2959_p5), 48, %s2877_s15 }
  0x17   : > { %s2985_s7 = scalar_lea.vmem %s3274_s0, %s2775_s30  ;;  %s195_s10 = scalar_lea.vmem %s3276_s2, %s2430_s4 }
  0x18   : > { %v2483_v1 = vld [vmem:[%s2985_s7] sm:$0xff]   ;;  %v2530_v2 = vld [vmem:[%s2985_s7 + $0x8] sm:$0xff]   ;;  %v2531_v8 = vld [vmem:[%s2985_s7 + $0x10] sm:$0xff]   ;;  %s2220_s23 = sadd.s32 (%p2959_p5), %s2873_s14, %s2776_s12 }
  0x19   : > { %v2484_v3 = vunpack.c.l.bf16 %v2483_v1  ;;  %v2485_v4 = vunpack.c.h.bf16 %v2483_v1  ;;  %v2992_v5 = vld [vmem:[%s195_s10] sm:$0xff]  ;;  %v2488_v6 = vunpack.c.l.bf16 %v2530_v2  ;;  %v2489_v7 = vunpack.c.h.bf16 %v2530_v2  ;;  %v2532_v11 = vld [vmem:[%s2985_s7 + $0x18] sm:$0xff]   ;;  %v2534_v17 = vld [vmem:[%s2985_s7 + $0x28] sm:$0xff]   ;;  %s2479_s26 = sshll.u32 (%p2959_p5), %s2220_s23, 3 }
  0x1a   : > { %v2492_v9 = vunpack.c.l.bf16 %v2531_v8  ;;  %v2493_v10 = vunpack.c.h.bf16 %v2531_v8  ;;  %v2496_v12 = vunpack.c.l.bf16 %v2532_v11  ;;  %v2497_v13 = vunpack.c.h.bf16 %v2532_v11  ;;  %v2533_v14 = vld [vmem:[%s2985_s7 + $0x20] sm:$0xff]   ;;  %v2535_v20 = vld [vmem:[%s2985_s7 + $0x30] sm:$0xff]   ;;  %v2536_v23 = vld [vmem:[%s2985_s7 + $0x38] sm:$0xff]   ;;  %s3215_s15 = scalar_lea.vmem (%p2959_p5), %s3277_s3, %s2479_s26 }
  0x1b   : > { %2615 = vmatpush3.msra.mxu0 %v2484_v3  ;;  %2620 = vmatpush3.msra.mxu1 %v2485_v4  ;;  %v2500_v15 = vunpack.c.l.bf16 %v2533_v14  ;;  %v2501_v16 = vunpack.c.h.bf16 %v2533_v14  ;;  %v2504_v18 = vunpack.c.l.bf16 %v2534_v17  ;;  %v2505_v19 = vunpack.c.h.bf16 %v2534_v17  ;;  %v2537_v26 = vld [vmem:[%s2985_s7 + $0x40] sm:$0xff]   ;;  %v2538_v29 = vld [vmem:[%s2985_s7 + $0x48] sm:$0xff]   ;;  %v2539_v32 = vld [vmem:[%s2985_s7 + $0x50] sm:$0xff]  }
  0x1c   : > { %2617 = vmatmul.mubr.msk.f32.vlgmr.msra.gmra.mxu0 %vm245_vm1, %v2992_v5  ;;  %2622 = vmatmul.mubr.msk.f32.vlgmr.msra.gmra.mxu1 %vm245_vm1, %v2992_v5  ;;  %v2508_v21 = vunpack.c.l.bf16 %v2535_v20  ;;  %v2509_v22 = vunpack.c.h.bf16 %v2535_v20  ;;  %v2512_v24 = vunpack.c.l.bf16 %v2536_v23  ;;  %v2513_v25 = vunpack.c.h.bf16 %v2536_v23  ;;  %v2540_v35 = vld [vmem:[%s2985_s7 + $0x58] sm:$0xff]  }
  0x1d   : > { %2624 = vmatprep.subr.mxu0 %v2891_v0  ;;  %2629 = vmatprep.subr.mxu1 %v2891_v0  ;;  %v2516_v27 = vunpack.c.l.bf16 %v2537_v26  ;;  %v2517_v28 = vunpack.c.h.bf16 %v2537_v26  ;;  %v2520_v30 = vunpack.c.l.bf16 %v2538_v29  ;;  %v2521_v31 = vunpack.c.h.bf16 %v2538_v29 }
  0x1e   : > { %2625 = vmatpush3.msra.mxu0 %v2488_v6  ;;  %2630 = vmatpush3.msra.mxu1 %v2489_v7  ;;  %v2524_v33 = vunpack.c.l.bf16 %v2539_v32  ;;  %v2525_v34 = vunpack.c.h.bf16 %v2539_v32  ;;  %v2528_v36 = vunpack.c.l.bf16 %v2540_v35  ;;  %v2529_v37 = vunpack.c.h.bf16 %v2540_v35 }
  0x1f   : > { %2626 = vmatprep.mubr.msk.f32.mxu0 %vm2892_vm0, %v2891_v0  ;;  %2631 = vmatprep.mubr.msk.f32.mxu1 %vm2892_vm0, %v2891_v0 }
  0x20   : > { %2627 = vmatmul.mubr.msk.f32.vlgmr.msra.gmra.mxu0 %vm245_vm1, %v2992_v5  ;;  %2632 = vmatmul.mubr.msk.f32.vlgmr.msra.gmra.mxu1 %vm245_vm1, %v2992_v5 }
  0x21   : > { %2634 = vmatprep.subr.mxu0 %v2891_v0  ;;  %2639 = vmatprep.subr.mxu1 %v2891_v0 }
  0x22   : > { %2635 = vmatpush3.msra.mxu0 %v2492_v9  ;;  %2640 = vmatpush3.msra.mxu1 %v2493_v10 }
  0x23   : > { %2636 = vmatprep.mubr.msk.f32.mxu0 %vm2892_vm0, %v2891_v0  ;;  %2641 = vmatprep.mubr.msk.f32.mxu1 %vm2892_vm0, %v2891_v0 }
  0x24   : > { %2637 = vmatmul.mubr.msk.f32.vlgmr.msra.gmra.mxu0 %vm245_vm1, %v2992_v5  ;;  %2642 = vmatmul.mubr.msk.f32.vlgmr.msra.gmra.mxu1 %vm245_vm1, %v2992_v5 }
  0x25   : > { %2644 = vmatprep.subr.mxu0 %v2891_v0  ;;  %2649 = vmatprep.subr.mxu1 %v2891_v0 }
  0x26   : > { %2645 = vmatpush3.msra.mxu0 %v2496_v12  ;;  %2650 = vmatpush3.msra.mxu1 %v2497_v13 }
  0x27   : > { %2646 = vmatprep.mubr.msk.f32.mxu0 %vm2892_vm0, %v2891_v0  ;;  %2651 = vmatprep.mubr.msk.f32.mxu1 %vm2892_vm0, %v2891_v0 }
  0x28   : > { %2647 = vmatmul.mubr.msk.f32.vlgmr.msra.gmra.mxu0 %vm245_vm1, %v2992_v5  ;;  %2652 = vmatmul.mubr.msk.f32.vlgmr.msra.gmra.mxu1 %vm245_vm1, %v2992_v5 }
  0x29   : > { %2654 = vmatprep.subr.mxu0 %v2891_v0  ;;  %2659 = vmatprep.subr.mxu1 %v2891_v0 }
  0x2a   : > { %2655 = vmatpush3.msra.mxu0 %v2500_v15  ;;  %2660 = vmatpush3.msra.mxu1 %v2501_v16 }
  0x2b   : > { %2656 = vmatprep.mubr.msk.f32.mxu0 %vm2892_vm0, %v2891_v0  ;;  %2661 = vmatprep.mubr.msk.f32.mxu1 %vm2892_vm0, %v2891_v0 }
  0x2c   : > { %2657 = vmatmul.mubr.msk.f32.vlgmr.msra.gmra.mxu0 %vm245_vm1, %v2992_v5  ;;  %2662 = vmatmul.mubr.msk.f32.vlgmr.msra.gmra.mxu1 %vm245_vm1, %v2992_v5 }
  0x2d   : > { %2664 = vmatprep.subr.mxu0 %v2891_v0  ;;  %2669 = vmatprep.subr.mxu1 %v2891_v0 }
  0x2e   : > { %2665 = vmatpush3.msra.mxu0 %v2504_v18  ;;  %2670 = vmatpush3.msra.mxu1 %v2505_v19 }
  0x2f   : > { %2666 = vmatprep.mubr.msk.f32.mxu0 %vm2892_vm0, %v2891_v0  ;;  %2671 = vmatprep.mubr.msk.f32.mxu1 %vm2892_vm0, %v2891_v0 }
  0x30   : > { %2667 = vmatmul.mubr.msk.f32.vlgmr.msra.gmra.mxu0 %vm245_vm1, %v2992_v5  ;;  %2672 = vmatmul.mubr.msk.f32.vlgmr.msra.gmra.mxu1 %vm245_vm1, %v2992_v5 }
  0x31   : > { %2674 = vmatprep.subr.mxu0 %v2891_v0  ;;  %2679 = vmatprep.subr.mxu1 %v2891_v0 }
  0x32   : > { %2675 = vmatpush3.msra.mxu0 %v2508_v21  ;;  %2680 = vmatpush3.msra.mxu1 %v2509_v22 }
  0x33   : > { %2676 = vmatprep.mubr.msk.f32.mxu0 %vm2892_vm0, %v2891_v0  ;;  %2681 = vmatprep.mubr.msk.f32.mxu1 %vm2892_vm0, %v2891_v0 }
  0x34   : > { %2677 = vmatmul.mubr.msk.f32.vlgmr.msra.gmra.mxu0 %vm245_vm1, %v2992_v5  ;;  %2682 = vmatmul.mubr.msk.f32.vlgmr.msra.gmra.mxu1 %vm245_vm1, %v2992_v5 }
  0x35   : > { %2684 = vmatprep.subr.mxu0 %v2891_v0  ;;  %2689 = vmatprep.subr.mxu1 %v2891_v0 }
  0x36   : > { %2685 = vmatpush3.msra.mxu0 %v2512_v24  ;;  %2690 = vmatpush3.msra.mxu1 %v2513_v25 }
  0x37   : > { %2686 = vmatprep.mubr.msk.f32.mxu0 %vm2892_vm0, %v2891_v0  ;;  %2691 = vmatprep.mubr.msk.f32.mxu1 %vm2892_vm0, %v2891_v0 }
  0x38   : > { %2687 = vmatmul.mubr.msk.f32.vlgmr.msra.gmra.mxu0 %vm245_vm1, %v2992_v5  ;;  %2692 = vmatmul.mubr.msk.f32.vlgmr.msra.gmra.mxu1 %vm245_vm1, %v2992_v5 }
  0x39   : > { %2694 = vmatprep.subr.mxu0 %v2891_v0  ;;  %2699 = vmatprep.subr.mxu1 %v2891_v0 }
  0x3a   : > { %2695 = vmatpush3.msra.mxu0 %v2516_v27  ;;  %2700 = vmatpush3.msra.mxu1 %v2517_v28 }
  0x3b   : > { %2696 = vmatprep.mubr.msk.f32.mxu0 %vm2892_vm0, %v2891_v0  ;;  %2701 = vmatprep.mubr.msk.f32.mxu1 %vm2892_vm0, %v2891_v0 }
  0x3c   : > { %2697 = vmatmul.mubr.msk.f32.vlgmr.msra.gmra.mxu0 %vm245_vm1, %v2992_v5  ;;  %2702 = vmatmul.mubr.msk.f32.vlgmr.msra.gmra.mxu1 %vm245_vm1, %v2992_v5 }
  0x3d   : > { %2704 = vmatprep.subr.mxu0 %v2891_v0  ;;  %2709 = vmatprep.subr.mxu1 %v2891_v0 }
  0x3e   : > { %2705 = vmatpush3.msra.mxu0 %v2520_v30  ;;  %2710 = vmatpush3.msra.mxu1 %v2521_v31 }
  0x3f   : > { %2706 = vmatprep.mubr.msk.f32.mxu0 %vm2892_vm0, %v2891_v0  ;;  %2711 = vmatprep.mubr.msk.f32.mxu1 %vm2892_vm0, %v2891_v0 }
  0x40   : > { %2707 = vmatmul.mubr.msk.f32.vlgmr.msra.gmra.mxu0 %vm245_vm1, %v2992_v5  ;;  %2712 = vmatmul.mubr.msk.f32.vlgmr.msra.gmra.mxu1 %vm245_vm1, %v2992_v5 }
  0x41   : > { %2714 = vmatprep.subr.mxu0 %v2891_v0  ;;  %2719 = vmatprep.subr.mxu1 %v2891_v0 }
  0x42   : > { %2715 = vmatpush3.msra.mxu0 %v2524_v33  ;;  %2720 = vmatpush3.msra.mxu1 %v2525_v34 }
  0x43   : > { %2716 = vmatprep.mubr.msk.f32.mxu0 %vm2892_vm0, %v2891_v0  ;;  %2721 = vmatprep.mubr.msk.f32.mxu1 %vm2892_vm0, %v2891_v0 }
  0x44   : > { %2717 = vmatmul.mubr.msk.f32.vlgmr.msra.gmra.mxu0 %vm245_vm1, %v2992_v5  ;;  %2722 = vmatmul.mubr.msk.f32.vlgmr.msra.gmra.mxu1 %vm245_vm1, %v2992_v5 }
  0x45   : > { %2724 = vmatprep.subr.mxu0 %v2891_v0  ;;  %2729 = vmatprep.subr.mxu1 %v2891_v0 }
  0x46   : > { %2725 = vmatpush3.msra.mxu0 %v2528_v36  ;;  %2730 = vmatpush3.msra.mxu1 %v2529_v37 }
  0x47   : > { %2726 = vmatprep.mubr.msk.f32.mxu0 %vm2892_vm0, %v2891_v0  ;;  %2731 = vmatprep.mubr.msk.f32.mxu1 %vm2892_vm0, %v2891_v0 }
  0x48   : > { %2727 = vmatmul.mubr.msk.f32.vlgmr.msra.gmra.mxu0 %vm245_vm1, %v2992_v5  ;;  %2732 = vmatmul.mubr.msk.f32.vlgmr.msra.gmra.mxu1 %vm245_vm1, %v2992_v5 }
  0x49   : > { %2734 = vmatprep.subr.mxu0 %v1929_v38  ;;  %2772 = vmatprep.subr.mxu1 %v1929_v38 }
  0x4a   : > { %2735 = vmatpush3.msra.mxu0 %v1929_v38  ;;  %2773 = vmatpush3.msra.mxu1 %v1929_v38 }
  0xdc   : > { %v315_v39 = vpop.f32.mrf.mxu0  ;;  %v385_v40 = vpop.f32.mrf.mxu1 }
  0xdd   : > { %2736 = vmatprep.mubr.msk.f32.mxu0 %vm245_vm1, %v315_v39 }
  0xde   : > { %v2618_v41 = vpop.f32.mrf.mxu0  ;;  %v2623_v42 = vpop.f32.mrf.mxu1  ;;  %2737 = vmatmul.mubr.msk.f32.vlgmr.msra.gmra.mxu0 %vm245_vm1, %v385_v40 }
  0xe0   : > { %v455_v43 = vpop.f32.mrf.mxu0  ;;  %v525_v44 = vpop.f32.mrf.mxu1 }
  0xe1   : > { %2739 = vmatprep.mubr.msk.f32.mxu0 %vm245_vm1, %v455_v43 }
  0xe2   : > { %v2628_v45 = vpop.f32.mrf.mxu0  ;;  %v2633_v46 = vpop.f32.mrf.mxu1  ;;  %2740 = vmatmul.mubr.msk.f32.gmra.mxu0 %vm245_vm1, %v525_v44 }
  0xe4   : > { %v595_v47 = vpop.f32.mrf.mxu0  ;;  %v665_v48 = vpop.f32.mrf.mxu1 }
  0xe5   : > { %2742 = vmatprep.mubr.msk.f32.mxu0 %vm245_vm1, %v595_v47 }
  0xe6   : > { %v2638_v49 = vpop.f32.mrf.mxu0  ;;  %v2643_v50 = vpop.f32.mrf.mxu1  ;;  %2743 = vmatmul.mubr.msk.f32.gmra.mxu0 %vm245_vm1, %v665_v48 }
  0xe8   : > { %v735_v51 = vpop.f32.mrf.mxu0  ;;  %v805_v52 = vpop.f32.mrf.mxu1 }
  0xe9   : > { %2745 = vmatprep.mubr.msk.f32.mxu0 %vm245_vm1, %v735_v51 }
  0xea   : > { %v2648_v53 = vpop.f32.mrf.mxu0  ;;  %v2653_v54 = vpop.f32.mrf.mxu1  ;;  %2746 = vmatmul.mubr.msk.f32.gmra.mxu0 %vm245_vm1, %v805_v52 }
  0xec   : > { %v875_v55 = vpop.f32.mrf.mxu0  ;;  %v945_v56 = vpop.f32.mrf.mxu1 }
  0xed   : > { %2748 = vmatprep.mubr.msk.f32.mxu0 %vm245_vm1, %v875_v55 }
  0xee   : > { %v2658_v57 = vpop.f32.mrf.mxu0  ;;  %v2663_v58 = vpop.f32.mrf.mxu1  ;;  %2749 = vmatmul.mubr.msk.f32.gmra.mxu0 %vm245_vm1, %v945_v56 }
  0xf0   : > { %v1015_v59 = vpop.f32.mrf.mxu0  ;;  %v1085_v60 = vpop.f32.mrf.mxu1 }
  0xf1   : > { %2751 = vmatprep.mubr.msk.f32.mxu0 %vm245_vm1, %v1015_v59 }
  0xf2   : > { %v2668_v61 = vpop.f32.mrf.mxu0  ;;  %v2673_v62 = vpop.f32.mrf.mxu1  ;;  %2752 = vmatmul.mubr.msk.f32.gmra.mxu0 %vm245_vm1, %v1085_v60 }
  0xf4   : > { %v1155_v63 = vpop.f32.mrf.mxu0  ;;  %v1225_v0 = vpop.f32.mrf.mxu1 }
  0xf5   : > { %2754 = vmatprep.mubr.msk.f32.mxu1 %vm245_vm1, %v1155_v63 }
  0xf6   : > { %v2678_v1 = vpop.f32.mrf.mxu0  ;;  %v2683_v2 = vpop.f32.mrf.mxu1  ;;  %2755 = vmatmul.mubr.msk.f32.vlgmr.msra.gmra.mxu1 %vm245_vm1, %v1225_v0 }
  0xf8   : > { %v1295_v3 = vpop.f32.mrf.mxu0  ;;  %v1365_v4 = vpop.f32.mrf.mxu1 }
  0xf9   : > { %2757 = vmatprep.mubr.msk.f32.mxu1 %vm245_vm1, %v1295_v3 }
  0xfa   : > { %v2688_v5 = vpop.f32.mrf.mxu0  ;;  %v2693_v6 = vpop.f32.mrf.mxu1  ;;  %2758 = vmatmul.mubr.msk.f32.gmra.mxu1 %vm245_vm1, %v1365_v4 }
  0xfc   : > { %v1435_v7 = vpop.f32.mrf.mxu0  ;;  %v1505_v8 = vpop.f32.mrf.mxu1 }
  0xfd   : > { %2760 = vmatprep.mubr.msk.f32.mxu1 %vm245_vm1, %v1435_v7 }
  0xfe   : > { %v2698_v9 = vpop.f32.mrf.mxu0  ;;  %v2703_v10 = vpop.f32.mrf.mxu1  ;;  %2761 = vmatmul.mubr.msk.f32.gmra.mxu1 %vm245_vm1, %v1505_v8 }
 0x100   : > { %v1575_v11 = vpop.f32.mrf.mxu0  ;;  %v1645_v12 = vpop.f32.mrf.mxu1 }
 0x101   : > { %2763 = vmatprep.mubr.msk.f32.mxu1 %vm245_vm1, %v1575_v11 }
 0x102   : > { %v2708_v13 = vpop.f32.mrf.mxu0  ;;  %v2713_v14 = vpop.f32.mrf.mxu1  ;;  %2764 = vmatmul.mubr.msk.f32.gmra.mxu1 %vm245_vm1, %v1645_v12 }
 0x104   : > { %v1715_v15 = vpop.f32.mrf.mxu0  ;;  %v1785_v16 = vpop.f32.mrf.mxu1 }
 0x105   : > { %2766 = vmatprep.mubr.msk.f32.mxu1 %vm245_vm1, %v1715_v15 }
 0x106   : > { %v2718_v17 = vpop.f32.mrf.mxu0  ;;  %v2723_v18 = vpop.f32.mrf.mxu1  ;;  %2767 = vmatmul.mubr.msk.f32.gmra.mxu1 %vm245_vm1, %v1785_v16 }
 0x108   : > { %v1855_v19 = vpop.f32.mrf.mxu0  ;;  %v1925_v20 = vpop.f32.mrf.mxu1 }
 0x109   : > { %2769 = vmatprep.mubr.msk.f32.mxu1 %vm245_vm1, %v1855_v19 }
 0x10a   : > { %v2728_v21 = vpop.f32.mrf.mxu0  ;;  %v2733_v22 = vpop.f32.mrf.mxu1  ;;  %2770 = vmatmul.mubr.msk.f32.gmra.mxu1 %vm245_vm1, %v1925_v20 }
 0x19e   : > { %v2738_v23 = vpop.f32.mrf.mxu0 }
 0x19f   : > { %2189 = vst.msk [vmem:[%s3146_s25 + $0x8] sm:$0xff] %vm2187_vm2, %v2738_v23 }
 0x1a0   : > { %v2068_v24 = vpop.f32.mrf.mxu0 }
 0x1a1   : > { %2188 = vst.msk [vmem:[%s3146_s25] sm:$0xff] %vm2187_vm2, %v2068_v24 }
 0x1a2   : > { %v2741_v25 = vpop.f32.mrf.mxu0 }
 0x1a3   : > { %2191 = vst.msk [vmem:[%s3146_s25 + $0x18] sm:$0xff] %vm2187_vm2, %v2741_v25 }
 0x1a4   : > { %v2078_v26 = vpop.f32.mrf.mxu0 }
 0x1a5   : > { %2190 = vst.msk [vmem:[%s3146_s25 + $0x10] sm:$0xff] %vm2187_vm2, %v2078_v26 }
 0x1a6   : > { %v2744_v27 = vpop.f32.mrf.mxu0  ;;  %v2299_v48 = vld [vmem:[%s3146_s25 + $0x8] sm:$0xff] (%p2959_p5) }
 0x1a7   : > { %2193 = vst.msk [vmem:[%s3146_s25 + $0x28] sm:$0xff] %vm2187_vm2, %v2744_v27  ;;  %2300 = vst [vmem:[%s3215_s15 + $0x10] sm:$0xff] (%p2959_p5), %v2299_v48 }
 0x1a8   : > { %v2088_v28 = vpop.f32.mrf.mxu0  ;;  %v2297_v47 = vld [vmem:[%s3146_s25] sm:$0xff] (%p2959_p5) }
 0x1a9   : > { %2192 = vst.msk [vmem:[%s3146_s25 + $0x20] sm:$0xff] %vm2187_vm2, %v2088_v28  ;;  %2298 = vst [vmem:[%s3215_s15] sm:$0xff] (%p2959_p5), %v2297_v47 }
 0x1aa   : > { %v2747_v29 = vpop.f32.mrf.mxu0  ;;  %v2303_v50 = vld [vmem:[%s3146_s25 + $0x18] sm:$0xff] (%p2959_p5) }
 0x1ab   : > { %2195 = vst.msk [vmem:[%s3146_s25 + $0x38] sm:$0xff] %vm2187_vm2, %v2747_v29  ;;  %2304 = vst [vmem:[%s3215_s15 + $0x30] sm:$0xff] (%p2959_p5), %v2303_v50 }
 0x1ac   : > { %v2098_v30 = vpop.f32.mrf.mxu0  ;;  %v2301_v49 = vld [vmem:[%s3146_s25 + $0x10] sm:$0xff] (%p2959_p5) }
 0x1ad   : > { %2194 = vst.msk [vmem:[%s3146_s25 + $0x30] sm:$0xff] %vm2187_vm2, %v2098_v30  ;;  %2302 = vst [vmem:[%s3215_s15 + $0x20] sm:$0xff] (%p2959_p5), %v2301_v49 }
 0x1ae   : > { %v2750_v31 = vpop.f32.mrf.mxu0  ;;  %v2307_v52 = vld [vmem:[%s3146_s25 + $0x28] sm:$0xff] (%p2959_p5) }
 0x1af   : > { %2197 = vst.msk [vmem:[%s3146_s25 + $0x48] sm:$0xff] %vm2187_vm2, %v2750_v31  ;;  %2308 = vst [vmem:[%s3215_s15 + $0x50] sm:$0xff] (%p2959_p5), %v2307_v52 }
 0x1b0   : > { %v2108_v32 = vpop.f32.mrf.mxu0  ;;  %v2305_v51 = vld [vmem:[%s3146_s25 + $0x20] sm:$0xff] (%p2959_p5) }
 0x1b1   : > { %2196 = vst.msk [vmem:[%s3146_s25 + $0x40] sm:$0xff] %vm2187_vm2, %v2108_v32  ;;  %2306 = vst [vmem:[%s3215_s15 + $0x40] sm:$0xff] (%p2959_p5), %v2305_v51 }
 0x1b2   : > { %v2753_v33 = vpop.f32.mrf.mxu0  ;;  %v2311_v54 = vld [vmem:[%s3146_s25 + $0x38] sm:$0xff] (%p2959_p5) }
 0x1b3   : > { %2199 = vst.msk [vmem:[%s3146_s25 + $0x58] sm:$0xff] %vm2187_vm2, %v2753_v33  ;;  %2312 = vst [vmem:[%s3215_s15 + $0x70] sm:$0xff] (%p2959_p5), %v2311_v54 }
 0x1b4   : > { %v2118_v34 = vpop.f32.mrf.mxu0  ;;  %v2309_v53 = vld [vmem:[%s3146_s25 + $0x30] sm:$0xff] (%p2959_p5) }
 0x1b5   : > { %2198 = vst.msk [vmem:[%s3146_s25 + $0x50] sm:$0xff] %vm2187_vm2, %v2118_v34  ;;  %2310 = vst [vmem:[%s3215_s15 + $0x60] sm:$0xff] (%p2959_p5), %v2309_v53 }
 0x1b6   : > { %v2756_v35 = vpop.f32.mrf.mxu1  ;;  %v2315_v56 = vld [vmem:[%s3146_s25 + $0x48] sm:$0xff] (%p2959_p5) }
 0x1b7   : > { %2201 = vst.msk [vmem:[%s3146_s25 + $0x68] sm:$0xff] %vm2187_vm2, %v2756_v35  ;;  %2316 = vst [vmem:[%s3215_s15 + $0x90] sm:$0xff] (%p2959_p5), %v2315_v56 }
 0x1b8   : > { %v2128_v36 = vpop.f32.mrf.mxu1  ;;  %v2313_v55 = vld [vmem:[%s3146_s25 + $0x40] sm:$0xff] (%p2959_p5) }
 0x1b9   : > { %2200 = vst.msk [vmem:[%s3146_s25 + $0x60] sm:$0xff] %vm2187_vm2, %v2128_v36  ;;  %2314 = vst [vmem:[%s3215_s15 + $0x80] sm:$0xff] (%p2959_p5), %v2313_v55 }
 0x1ba   : > { %v2759_v37 = vpop.f32.mrf.mxu1  ;;  %v2319_v58 = vld [vmem:[%s3146_s25 + $0x58] sm:$0xff] (%p2959_p5) }
 0x1bb   : > { %2203 = vst.msk [vmem:[%s3146_s25 + $0x78] sm:$0xff] %vm2187_vm2, %v2759_v37  ;;  %2320 = vst [vmem:[%s3215_s15 + $0xb0] sm:$0xff] (%p2959_p5), %v2319_v58 }
 0x1bc   : > { %v2138_v38 = vpop.f32.mrf.mxu1  ;;  %v2317_v57 = vld [vmem:[%s3146_s25 + $0x50] sm:$0xff] (%p2959_p5) }
 0x1bd   : > { %2202 = vst.msk [vmem:[%s3146_s25 + $0x70] sm:$0xff] %vm2187_vm2, %v2138_v38  ;;  %2318 = vst [vmem:[%s3215_s15 + $0xa0] sm:$0xff] (%p2959_p5), %v2317_v57 }
 0x1be   : > { %v2762_v39 = vpop.f32.mrf.mxu1  ;;  %v2323_v60 = vld [vmem:[%s3146_s25 + $0x68] sm:$0xff] (%p2959_p5) }
 0x1bf   : > { %2205 = vst.msk [vmem:[%s3146_s25 + $0x88] sm:$0xff] %vm2187_vm2, %v2762_v39  ;;  %2324 = vst [vmem:[%s3215_s15 + $0xd0] sm:$0xff] (%p2959_p5), %v2323_v60 }
 0x1c0   : > { %v2148_v40 = vpop.f32.mrf.mxu1  ;;  %v2321_v59 = vld [vmem:[%s3146_s25 + $0x60] sm:$0xff] (%p2959_p5) }
 0x1c1   : > { %2204 = vst.msk [vmem:[%s3146_s25 + $0x80] sm:$0xff] %vm2187_vm2, %v2148_v40  ;;  %2322 = vst [vmem:[%s3215_s15 + $0xc0] sm:$0xff] (%p2959_p5), %v2321_v59 }
 0x1c2   : > { %v2765_v41 = vpop.f32.mrf.mxu1  ;;  %v2327_v62 = vld [vmem:[%s3146_s25 + $0x78] sm:$0xff] (%p2959_p5) }
 0x1c3   : > { %2207 = vst.msk [vmem:[%s3146_s25 + $0x98] sm:$0xff] %vm2187_vm2, %v2765_v41  ;;  %2328 = vst [vmem:[%s3215_s15 + $0xf0] sm:$0xff] (%p2959_p5), %v2327_v62 }
 0x1c4   : > { %v2158_v42 = vpop.f32.mrf.mxu1  ;;  %v2325_v61 = vld [vmem:[%s3146_s25 + $0x70] sm:$0xff] (%p2959_p5) }
 0x1c5   : > { %2206 = vst.msk [vmem:[%s3146_s25 + $0x90] sm:$0xff] %vm2187_vm2, %v2158_v42  ;;  %2326 = vst [vmem:[%s3215_s15 + $0xe0] sm:$0xff] (%p2959_p5), %v2325_v61 }
 0x1c6   : > { %v2768_v43 = vpop.f32.mrf.mxu1  ;;  %v2331_v0 = vld [vmem:[%s3146_s25 + $0x88] sm:$0xff] (%p2959_p5) }
 0x1c7   : > { %2209 = vst.msk [vmem:[%s3146_s25 + $0xa8] sm:$0xff] %vm2187_vm2, %v2768_v43  ;;  %2332 = vst [vmem:[%s3215_s15 + $0x110] sm:$0xff] (%p2959_p5), %v2331_v0 }
 0x1c8   : > { %v2168_v44 = vpop.f32.mrf.mxu1  ;;  %v2329_v63 = vld [vmem:[%s3146_s25 + $0x80] sm:$0xff] (%p2959_p5) }
 0x1c9   : > { %2208 = vst.msk [vmem:[%s3146_s25 + $0xa0] sm:$0xff] %vm2187_vm2, %v2168_v44  ;;  %2218 = sbr.rel (!%p2959_p5) target bundleno = 470 (0x1d6), region = 36  ;;  %2330 = vst [vmem:[%s3215_s15 + $0x100] sm:$0xff] (%p2959_p5), %v2329_v63 }
 0x1ca   : > { %v2771_v45 = vpop.f32.mrf.mxu1  ;;  %v2335_v2 = vld [vmem:[%s3146_s25 + $0x98] sm:$0xff] (%p2959_p5) }
 0x1cb   : > { %2211 = vst.msk [vmem:[%s3146_s25 + $0xb8] sm:$0xff] %vm2187_vm2, %v2771_v45  ;;  %2336 = vst [vmem:[%s3215_s15 + $0x130] sm:$0xff] (%p2959_p5), %v2335_v2 }
 0x1cc   : > { %v2178_v46 = vpop.f32.mrf.mxu1  ;;  %v2333_v1 = vld [vmem:[%s3146_s25 + $0x90] sm:$0xff] (%p2959_p5) }
 0x1cd   : > { %2210 = vst.msk [vmem:[%s3146_s25 + $0xb0] sm:$0xff] %vm2187_vm2, %v2178_v46  ;;  %2334 = vst [vmem:[%s3215_s15 + $0x120] sm:$0xff] (%p2959_p5), %v2333_v1 }
 0x1ce   : > { %v2339_v4 = vld [vmem:[%s3146_s25 + $0xa8] sm:$0xff] }
 0x1cf   : > { %2340 = vst [vmem:[%s3215_s15 + $0x150] sm:$0xff] %v2339_v4 }
 0x1d0   : > { %v2337_v3 = vld [vmem:[%s3146_s25 + $0xa0] sm:$0xff] }
 0x1d1   : > { %2338 = vst [vmem:[%s3215_s15 + $0x140] sm:$0xff] %v2337_v3 }
 0x1d2   : > { %v2343_v6 = vld [vmem:[%s3146_s25 + $0xb8] sm:$0xff] }
 0x1d3   : > { %2344 = vst [vmem:[%s3215_s15 + $0x170] sm:$0xff] %v2343_v6 }
 0x1d4   : > { %v2341_v5 = vld [vmem:[%s3146_s25 + $0xb0] sm:$0xff] }
 0x1d5   : > { %2342 = vst [vmem:[%s3215_s15 + $0x160] sm:$0xff] %v2341_v5 }
 0x1d6 PF: > { %s13_s18 = sadd.s32 1, %s2889_s18   ;;  %s3279_s12 = smov %s2869_s13 }
 0x1d7   : > { %p10_p11 = scmp.ge.s32.totalorder %s13_s18, 6   ;;  %s3280_s13 = smov %s2970_s27 }
 0x1d8   : > { %s3281_s14 = smov %s2881_s16  ;;  %s3282_s15 = smov %s2885_s17 }
 0x1d9   : > { %s3283_s16 = smov %s3286_s19  ;;  %s3284_s17 = smov %s3290_s20 }
 0x1da   :  { %12 = sbr.rel (!%p10_p11) target bundleno = 4 (0x4), region = 103 }

</bundles_post_ra>
